<compile_context>
chip_gen: v7x
topology: tpu7x:2x2x1
jax: 0.10.0
libtpu: 0.0.40
codegen_flags: <defaults>
</compile_context>

<pallas_src>
import functools
import numpy as np
import jax
import jax.numpy as jnp
from jax import lax
from jax.experimental import pallas as pl
from jax.experimental.pallas import tpu as pltpu


def _round_up(v, m):
    return (v + m - 1) // m * m


# ----------------------------------------------------------------------------
# Tiny one-time probe: pin down pltpu.roll's rotation direction so the
# depthwise shift amounts are correct regardless of convention.
# ----------------------------------------------------------------------------
@functools.lru_cache(maxsize=None)
def _roll_shift_sign():
    def probe(x_ref, o_ref):
        o_ref[...] = pltpu.roll(x_ref[...], 1, 0)

    x = jnp.zeros((8, 128), jnp.float32).at[1, 0].set(1.0)
    y = pl.pallas_call(probe, out_shape=jax.ShapeDtypeStruct((8, 128), jnp.float32))(x)
    # jnp.roll convention: the marker at sublane 1 moves to sublane 2.
    return 1 if float(y[2, 0]) == 1.0 else -1


# ----------------------------------------------------------------------------
# Pallas kernel: one batch tile (NB elements) per grid step.
# ----------------------------------------------------------------------------
def _mnv4_block_kernel(x_ref, w_dw_ref, b_dw_ref,
                       w_exp_ref, s_exp_ref, b_exp_ref,
                       w_proj_ref, s_proj_ref, b_proj_ref,
                       o_ref, xp_ref,
                       *, k, stride, pad, H, W, Ho, Wo, use_residual, w_shifts):
    NB = x_ref.shape[0]
    Cin = x_ref.shape[-1]
    Hp, Wp = xp_ref.shape[1], xp_ref.shape[2]

    x_in = x_ref[...]                                   # (NB, H, W, Cin)

    # ---- zero-padded copy built in VMEM (no HBM pad round-trip) ----
    xp_ref[...] = jnp.zeros(xp_ref.shape, xp_ref.dtype)
    if stride == 1:
        # data at W-offset 0 (aligned store); zeros live on the right so the
        # roll wrap-around below sources zeros for the halo taps.
        xp_ref[:, pad:pad + H, 0:W, :] = x_in
    else:
        xp_ref[:, pad:pad + H, pad:pad + W, :] = x_in

    xp = xp_ref[...].astype(jnp.float32)                # (NB, Hp, Wp, Cin)
    w_dw = w_dw_ref[...].astype(jnp.float32)            # (k, k, Cin), BN scale folded

    # ---- depthwise conv (groups == Cin) ----
    acc = jnp.zeros((NB, Ho, Wo, Cin), jnp.float32)
    if stride == 1:
        xp3 = xp.reshape(NB * Hp, Wp, Cin)              # leading-dim collapse (free)
        for kw in range(k):
            sh = w_shifts[kw]
            xs = pltpu.roll(xp3, sh, 1) if sh else xp3  # XLU sublane rotate
            xs = xs.reshape(NB, Hp, Wp, Cin)
            for kh in range(k):
                acc = acc + xs[:, kh:kh + Ho, :Wo, :] * w_dw[kh, kw].reshape(1, 1, 1, Cin)
    else:
        for kh in range(k):
            for kw in range(k):
                win = xp[:, kh::stride, kw::stride, :][:, :Ho, :Wo, :]
                acc = acc + win * w_dw[kh, kw].reshape(1, 1, 1, Cin)

    # fused BN bias + ReLU (scale already folded into the depthwise weights)
    x_dw = jnp.maximum(acc + b_dw_ref[...].reshape(1, 1, 1, Cin), 0.0)

    # ---- 1x1 expansion: matmul over channels, bf16 operands, f32 accumulate ----
    M = NB * Ho * Wo
    x2 = x_dw.reshape(M, Cin).astype(jnp.bfloat16)
    h = jnp.dot(x2, w_exp_ref[...], preferred_element_type=jnp.float32)      # (M, E)
    h = jnp.maximum(h * s_exp_ref[...] + b_exp_ref[...], 0.0)

    # ---- 1x1 projection: matmul, BN, no activation ----
    y = jnp.dot(h.astype(jnp.bfloat16), w_proj_ref[...],
                preferred_element_type=jnp.float32)                          # (M, Cout)
    y = y * s_proj_ref[...] + b_proj_ref[...]

    if use_residual:
        y = y + x_in.astype(jnp.float32).reshape(M, Cin)   # drop_path_rate==0 -> identity

    Cout = y.shape[-1]
    # lane-dense store: collapse (Wo, Cout) into the lane axis (Wo*Cout lanes).
    y = y.reshape(NB, Ho, Wo, Cout).reshape(NB, Ho, Wo * Cout)
    o_ref[...] = y.astype(o_ref.dtype)


# ----------------------------------------------------------------------------
# Wrapper: NCHW in / NCHW out (matching the PyTorch module interface).
# ----------------------------------------------------------------------------
def mnv4_convnext_like_block(x_nchw, params, *, dw_kernel_size, stride, batch_block=None):
    k = dw_kernel_size
    pad = k // 2
    B, Cin, H, W = x_nchw.shape
    Ho = (H + 2 * pad - k) // stride + 1
    Wo = (W + 2 * pad - k) // stride + 1

    w_dw, s_dw, b_dw = params["w_dw"], params["s_dw"], params["b_dw"]
    w_exp, s_exp, b_exp = params["w_exp"], params["s_exp"], params["b_exp"]
    w_proj, s_proj, b_proj = params["w_proj"], params["s_proj"], params["b_proj"]
    E = w_exp.shape[1]
    Cout = w_proj.shape[1]
    use_residual = (stride == 1) and (Cin == Cout)

    # Fold depthwise BN scale into the depthwise weights (conv is linear per channel).
    w_dw_folded = (w_dw * s_dw.reshape(1, 1, Cin)).astype(jnp.float32)
    # bf16 MXU operands, f32 accumulation in-kernel.
    w_exp_bf = w_exp.astype(jnp.bfloat16)
    w_proj_bf = w_proj.astype(jnp.bfloat16)

    # NCHW -> NHWC (channels on the lane axis).
    x_nhwc = jnp.transpose(x_nchw, (0, 2, 3, 1))

    Hp = H + 2 * pad
    Wp = _round_up(W + 2 * pad, 8)        # sublane-aligned padded width (VMEM scratch)

    # Batch tile: grow the MXU M dimension (M = NB*Ho*Wo) while keeping the
    # per-step VMEM footprint modest (v7x budget is the smallest at 64 MiB).
    if batch_block is None:
        per_b_bytes = (2 * H * W * Cin + Hp * Wp * Cin
                       + 4 * Ho * Wo * max(Cin, E, Cout)) * 4
        best = 1
        for nb in range(1, B + 1):
            if B % nb:
                continue
            if nb * per_b_bytes > 8 * 1024 * 1024:
                break
            best = nb
            if nb * Ho * Wo >= 1024:
                break
        batch_block = best
    NB = batch_block
    assert B % NB == 0

    if stride == 1:
        sgn = _roll_shift_sign()
        w_shifts = tuple((sgn * (pad - kw)) % Wp for kw in range(k))
    else:
        w_shifts = None

    kern = functools.partial(_mnv4_block_kernel, k=k, stride=stride, pad=pad,
                             H=H, W=W, Ho=Ho, Wo=Wo, use_residual=use_residual,
                             w_shifts=w_shifts)

    full = lambda shape: pl.BlockSpec(shape, lambda b: (0,) * len(shape))

    out_flat = pl.pallas_call(
        kern,
        out_shape=jax.ShapeDtypeStruct((B, Ho, Wo * Cout), x_nchw.dtype),
        grid_spec=pltpu.PrefetchScalarGridSpec(
            num_scalar_prefetch=0,
            grid=(B // NB,),
            in_specs=[
                pl.BlockSpec((NB, H, W, Cin), lambda b: (b, 0, 0, 0)),  # input (unpadded)
                full((k, k, Cin)),                                      # dw weight (scale folded)
                full((1, Cin)),                                         # dw BN bias
                full((Cin, E)),                                         # expand weight (bf16)
                full((1, E)), full((1, E)),                             # exp BN scale/bias
                full((E, Cout)),                                        # project weight (bf16)
                full((1, Cout)), full((1, Cout)),                       # proj BN scale/bias
            ],
            out_specs=pl.BlockSpec((NB, Ho, Wo * Cout), lambda b: (b, 0, 0)),
            scratch_shapes=[pltpu.VMEM((NB, Hp, Wp, Cin), x_nchw.dtype)],
        ),
        compiler_params=pltpu.CompilerParams(dimension_semantics=("parallel",)),
    )(x_nhwc, w_dw_folded, b_dw, w_exp_bf, s_exp, b_exp, w_proj_bf, s_proj, b_proj)

    out_nhwc = out_flat.reshape(B, Ho, Wo, Cout)
    return jnp.transpose(out_nhwc, (0, 3, 1, 2))  # back to NCHW


# ----------------------------------------------------------------------------
# Deterministic parameters (eval-mode BN folded into per-channel scale/bias).
# ----------------------------------------------------------------------------
def make_params(key, in_channels, out_channels, expanded_channels, dw_kernel_size,
                eps=1e-5):
    k = dw_kernel_size
    ks = jax.random.split(key, 6)

    def bn_fold(kk, c):
        kg, kb, km, kv = jax.random.split(kk, 4)
        gamma = jax.random.normal(kg, (c,), jnp.float32) * 0.1 + 1.0
        beta = jax.random.normal(kb, (c,), jnp.float32) * 0.1
        mean = jax.random.normal(km, (c,), jnp.float32) * 0.1
        var = jax.random.uniform(kv, (c,), jnp.float32, 0.5, 1.5)
        scale = gamma / jnp.sqrt(var + eps)
        bias = beta - mean * scale
        return scale.reshape(1, c), bias.reshape(1, c)

    w_dw = jax.random.normal(ks[0], (k, k, in_channels), jnp.float32) * 0.1
    s_dw, b_dw = bn_fold(ks[1], in_channels)
    w_exp = jax.random.normal(ks[2], (in_channels, expanded_channels), jnp.float32) * 0.1
    s_exp, b_exp = bn_fold(ks[3], expanded_channels)
    w_proj = jax.random.normal(ks[4], (expanded_channels, out_channels), jnp.float32) * 0.1
    s_proj, b_proj = bn_fold(ks[5], out_channels)

    return dict(w_dw=w_dw, s_dw=s_dw, b_dw=b_dw,
                w_exp=w_exp, s_exp=s_exp, b_exp=b_exp,
                w_proj=w_proj, s_proj=s_proj, b_proj=b_proj)


# ----------------------------------------------------------------------------
# Pure-JAX reference (matches the PyTorch forward semantics in eval mode).
# ----------------------------------------------------------------------------
def ref_forward(x_nchw, params, *, dw_kernel_size, stride):
    k = dw_kernel_size
    pad = k // 2
    Cin = x_nchw.shape[1]
    Cout = params["w_proj"].shape[1]
    use_residual = (stride == 1) and (Cin == Cout)

    w_dw = jnp.transpose(params["w_dw"], (2, 0, 1))[:, None]        # (Cin,1,k,k)
    y = lax.conv_general_dilated(x_nchw, w_dw, (stride, stride),
                                 [(pad, pad), (pad, pad)],
                                 feature_group_count=Cin,
                                 dimension_numbers=("NCHW", "OIHW", "NCHW"))
    y = y * params["s_dw"].reshape(1, -1, 1, 1) + params["b_dw"].reshape(1, -1, 1, 1)
    y = jnp.maximum(y, 0.0)

    w_exp = params["w_exp"].T[:, :, None, None]
    h = lax.conv_general_dilated(y, w_exp, (1, 1), [(0, 0), (0, 0)],
                                 dimension_numbers=("NCHW", "OIHW", "NCHW"))
    h = h * params["s_exp"].reshape(1, -1, 1, 1) + params["b_exp"].reshape(1, -1, 1, 1)
    h = jnp.maximum(h, 0.0)

    w_proj = params["w_proj"].T[:, :, None, None]
    o = lax.conv_general_dilated(h, w_proj, (1, 1), [(0, 0), (0, 0)],
                                 dimension_numbers=("NCHW", "OIHW", "NCHW"))
    o = o * params["s_proj"].reshape(1, -1, 1, 1) + params["b_proj"].reshape(1, -1, 1, 1)

    if use_residual:
        o = o + x_nchw
    return o


if __name__ == "__main__":
    key = jax.random.PRNGKey(0)

    # Config 1: stride 1, in == out -> residual path (roll-based depthwise).
    B, Cin, H, W = 2, 32, 16, 16
    Cout, E, K, STRIDE = 32, 64, 3, 1
    kx, kp, key = jax.random.split(key, 3)
    x = jax.random.normal(kx, (B, Cin, H, W), jnp.float32)
    params = make_params(kp, Cin, Cout, E, K)
    out = jax.block_until_ready(
        mnv4_convnext_like_block(x, params, dw_kernel_size=K, stride=STRIDE))
    ref = jax.block_until_ready(ref_forward(x, params, dw_kernel_size=K, stride=STRIDE))
    np.testing.assert_allclose(np.asarray(out), np.asarray(ref), rtol=3e-2, atol=3e-2)

    # Config 2: stride 2, in != out -> no residual (strided downsampling path).
    B2, Cin2, H2, W2 = 2, 32, 16, 16
    Cout2, E2, K2, STRIDE2 = 48, 64, 3, 2
    kx2, kp2 = jax.random.split(key)
    x2 = jax.random.normal(kx2, (B2, Cin2, H2, W2), jnp.float32)
    params2 = make_params(kp2, Cin2, Cout2, E2, K2)
    out2 = jax.block_until_ready(
        mnv4_convnext_like_block(x2, params2, dw_kernel_size=K2, stride=STRIDE2))
    ref2 = jax.block_until_ready(ref_forward(x2, params2, dw_kernel_size=K2, stride=STRIDE2))
    np.testing.assert_allclose(np.asarray(out2), np.asarray(ref2), rtol=3e-2, atol=3e-2)

    print("KERNEL_OK")
</pallas_src>

<mosaic_0001>
module attributes {stable_mosaic.version = 11 : i64} {
  func.func @probe(%arg0: memref<8x128xf32, #tpu.memory_space<vmem>>, %arg1: memref<8x128xf32, #tpu.memory_space<vmem>>) attributes {dimension_semantics = [], scalar_prefetch = 0 : i64, scratch_operands = 0 : i64, tpu.core_type = #tpu.core_type<tc>} {
    %c0 = arith.constant 0 : index
    %c0_0 = arith.constant 0 : index
    %0 = vector.load %arg0[%c0, %c0_0] : memref<8x128xf32, #tpu.memory_space<vmem>>, vector<8x128xf32>
    %c1_i32 = arith.constant 1 : i32
    %1 = tpu.dynamic_rotate %0 by %c1_i32 dim 0 : vector<8x128xf32>, i32 -> vector<8x128xf32>
    %c0_1 = arith.constant 0 : index
    %c0_2 = arith.constant 0 : index
    %2 = vector.load %arg1[%c0_1, %c0_2] : memref<8x128xf32, #tpu.memory_space<vmem>>, vector<8x128xf32>
    tpu.vector_store %arg1[%c0_1, %c0_2], %1 {strides = array<i32>} : memref<8x128xf32, #tpu.memory_space<vmem>>, vector<8x128xf32>,
    return
  }
}

</mosaic_0001>

<bundles_post_ra>
// kernel: tpu_custom_call.1
= control target key start
LH: loop header
LB: loop body
LE: loop exit
PB: predicated region body
PF: predicated region fallthrough
CT: control target
= control target key end

     0   :  { %6 = vsyncpa [#allocation3], 0  ;;  %s125_s0 = inlined_call_operand.hbm [shape: f32[8,128], index: 0, kind: input, shape index: {}]   ;;  %s126_s1 = inlined_call_operand.hbm [shape: f32[8,128], index: 1, kind: output, shape index: {}]  }
   0x1   :  { %7 = vsyncpa [#allocation4], 0  ;;  %s89_s6 = smov [#allocation2]   ;;  %s41_s10 = scalar_lea.hbm %s125_s0, 128 }
   0x2   :  { %s14_s7 = sshll.u32 %s89_s6, 4  ;;  %p42_p0 = scmp.ne.s32.totalorder %s125_s0, %s41_s10  ;;  %s15_s7 = int_to_ptr.vmem [resolvable:$true] %s14_s7 }
   0x3   :  { %p45_p1 = scmp.lt.u32.totalorder %s41_s10, %s125_s0 }
   0x5   :  { %p47_p2 = pnand %p45_p1, %p42_p0 }
   0x7   :  { %50 = shalt.err (!%p47_p2)
}
   0x8   :  { %s51_s15 = scalar_lea.vmem %s15_s7, 128  ;;  %p56_p4 = scmp.lt.s32.totalorder %s15_s7, %s15_s7 }
   0x9   :  { %p52_p3 = scmp.ne.s32.totalorder %s15_s7, %s51_s15  ;;  %p57_p5 = scmp.lt.s32.totalorder %s51_s15, %s51_s15 }
   0xb   :  { %p58_p6 = por %p57_p5, %p56_p4 }
   0xd   :  { %p59_p7 = pnand %p58_p6, %p52_p3 }
   0xf   :  { %62 = shalt.err (!%p59_p7)
}
  0x10   :  { %17 = dma.hbm_to_vmem [thread:$0]  %s125_s0, 128, %s15_s7, [#allocation3]  }
  0x11   :  { %85 = dma.done.wait [#allocation3], 128  }
  0x12   :  { %86 = vsyncadd [#allocation3], 4294967168  ;;  %s90_s18 = smov [#allocation5]   ;;  %v21_v0 = vld [vmem:[#allocation2] sm:$0xff] }
  0x13   :  { %s30_s19 = sshll.u32 %s90_s18, 4  ;;  %v22_v1 = vrot.slane %v21_v0, 7  ;;  %s31_s19 = int_to_ptr.vmem [resolvable:$true] %s30_s19 }
  0x14   :  { %s63_s20 = scalar_lea.vmem %s31_s19, 128  ;;  %p68_p9 = scmp.lt.s32.totalorder %s31_s19, %s31_s19 }
  0x15   :  { %23 = vst [vmem:[#allocation5] sm:$0xff] %v22_v1  ;;  %p64_p8 = scmp.ne.s32.totalorder %s31_s19, %s63_s20  ;;  %p69_p10 = scmp.lt.s32.totalorder %s63_s20, %s63_s20 }
  0x17   :  { %p70_p11 = por %p69_p10, %p68_p9 }
  0x19   :  { %p71_p12 = pnand %p70_p11, %p64_p8 }
  0x1b   :  { %74 = shalt.err (!%p71_p12)
}
  0x1c   :  { %s75_s23 = scalar_lea.hbm %s126_s1, 128 }
  0x1d   :  { %p76_p13 = scmp.ne.s32.totalorder %s126_s1, %s75_s23  ;;  %p79_p0 = scmp.lt.u32.totalorder %s75_s23, %s126_s1 }
  0x1f   :  { %p81_p1 = pnand %p79_p0, %p76_p13 }
  0x21   :  { %84 = shalt.err (!%p81_p1)
}
  0x22   :  { %33 = dma.vmem_to_hbm [thread:$0]  %s31_s19, 128, %s126_s1, [#allocation4]  }
  0x23   :  { %87 = dma.done.wait [#allocation4], 128  }
  0x24   :  { %88 = vsyncadd [#allocation4], 4294967168 }
  0x25   :  { %37 = vsyncpa [#allocation3], 1 }
  0x26   :  { %38 = vsyncpa [#allocation4], 1 }

</bundles_post_ra>
